<compile_context>
chip_gen: v5e
topology: v5e:2x2
jax: 0.10.0
libtpu: 0.0.40
codegen_flags: <defaults>
</compile_context>

<pallas_src>
import numpy as np
import jax
import jax.numpy as jnp
from jax.experimental import pallas as pl
from jax.experimental.pallas import tpu as pltpu


def _round_up(v, m):
    return (v + m - 1) // m * m


def _length_regulator_kernel(mel_ref, bounds_ref, x_ref, out_ref):
    # mel_ref   : (N,)        int32 SMEM (scalar prefetch) -- per-batch mel length
    # bounds_ref: (1, 2, Lp)  int32  -- row 0: segment starts, row 1: segment ends
    # x_ref     : (1, Lp, Hp) x.dtype
    # out_ref   : (1, tt, Hp) x.dtype
    tt = out_ref.shape[1]
    b = pl.program_id(0)
    tile_start = pl.program_id(1) * tt
    mel = mel_ref[b]

    # Tiles entirely beyond this batch element's content are pure zero padding:
    # skip the mask build and the matmul, just store zeros (lane-dense, cheap).
    @pl.when(tile_start >= mel)
    def _pad_tile():
        out_ref[...] = jnp.zeros_like(out_ref)

    @pl.when(tile_start < mel)
    def _content_tile():
        starts = bounds_ref[0, 0:1, :]                            # (1, Lp) int32
        ends = bounds_ref[0, 1:2, :]                              # (1, Lp) int32
        # alignment[t, l] = 1 iff starts[l] <= tile_start + t < ends[l].
        # Column iota + broadcasted compares: no full (tt, Lp) iota / add passes.
        t_col = jax.lax.broadcasted_iota(jnp.int32, (tt, 1), 0) + tile_start
        align = jnp.logical_and(t_col >= starts, t_col < ends).astype(x_ref.dtype)
        # One-hot row selection as an MXU matmul; f32 accumulation (exact:
        # exactly one nonzero per output row since segments are disjoint).
        out_ref[0] = jnp.dot(
            align, x_ref[0], preferred_element_type=jnp.float32
        ).astype(out_ref.dtype)


def length_regulator(x, duration, max_len=None, *, time_tile=512,
                     static_expand_max_len=None, check_static_bound=False):
    """x: (N, L, H), duration: (N, L) int. Returns (output (N, T, H), mel_len (N,)).

    T = max(expand_max_len, max_len or 0), matching the PyTorch module.
    Pass `static_expand_max_len` (an upper bound on max(sum(duration))) to avoid
    the device->host sync; set check_static_bound=True to verify it (costs the
    sync it was meant to avoid, so only for debugging). If the bound is too
    small, frames beyond it are silently dropped.
    """
    N, L, H = x.shape
    duration = duration.astype(jnp.int32)
    mel_len = jnp.sum(duration, axis=-1).astype(jnp.int32)       # (N,)

    # Static output time length (data-dependent in the original module).
    if static_expand_max_len is not None:
        expand_max_len = int(static_expand_max_len)
        if check_static_bound:
            true_max = int(jax.device_get(jnp.max(mel_len)))
            if true_max > expand_max_len:
                raise ValueError(
                    f"static_expand_max_len={expand_max_len} < true max mel "
                    f"length {true_max}: frames would be truncated.")
    else:
        # Host sync: only needed when no static bound is supplied.
        expand_max_len = int(jax.device_get(jnp.max(mel_len)))

    T_out = expand_max_len
    if max_len is not None and int(max_len) > T_out:
        T_out = int(max_len)

    if expand_max_len == 0:
        # All durations zero: output is all padding (matches eager PyTorch + pad).
        return jnp.zeros((N, T_out, H), dtype=x.dtype), mel_len

    # Pad L to a multiple of 128 (lane-dense bounds, MXU-K aligned; zero
    # durations give empty segments -> all-zero alignment columns) and H to a
    # multiple of 128 (unmasked lane-dense output stores, full MXU-N tiles).
    Lp = _round_up(L, 128)
    Hp = _round_up(H, 128)
    x_p = x
    duration_p = duration
    if Lp != L:
        duration_p = jnp.pad(duration, ((0, 0), (0, Lp - L)))
        x_p = jnp.pad(x_p, ((0, 0), (0, Lp - L), (0, 0)))
    if Hp != H:
        x_p = jnp.pad(x_p, ((0, 0), (0, 0), (0, Hp - H)))

    # Segment boundaries precomputed in XLA on the tiny (N, Lp) array, fused
    # into a single (N, 2, Lp) input (one BlockSpec / DMA per grid step).
    ends = jnp.cumsum(duration_p, axis=-1).astype(jnp.int32)     # inclusive cumsum
    starts = ends - duration_p                                   # exclusive cumsum
    bounds = jnp.stack([starts, ends], axis=1)                   # (N, 2, Lp)

    # Kernel grid only covers the content frames; the max_len zero tail (if any)
    # is produced by a fused XLA pad outside the sequential grid loop.
    T_k = _round_up(expand_max_len, 8)
    tt = min(_round_up(int(time_tile), 8), T_k)

    # Keep the per-step working set bounded (v7x: 64 MiB physical / 32 MiB
    # default scoped VMEM). Double-buffered blocks + mask-build intermediates.
    itemsize = jnp.dtype(x.dtype).itemsize

    def _step_bytes(tile):
        blocks = 2 * (Lp * Hp * itemsize + 2 * Lp * 4 + tile * Hp * itemsize)
        interm = 3 * tile * Lp * 4
        return blocks + interm

    while tt > 128 and _step_bytes(tt) > (24 << 20):
        tt = _round_up(tt // 2, 8)

    grid = (N, pl.cdiv(T_k, tt))

    # On v7x the megacore split should land on the batch axis (keeps each
    # core's x block resident across its t range); only when N == 1 let the
    # time axis be the parallel one.
    dim_sem = ("parallel", "arbitrary") if N >= 2 else ("parallel", "parallel")

    out = pl.pallas_call(
        _length_regulator_kernel,
        out_shape=jax.ShapeDtypeStruct((N, T_k, Hp), x.dtype),
        grid_spec=pltpu.PrefetchScalarGridSpec(
            num_scalar_prefetch=1,                                # mel_len -> SMEM
            grid=grid,
            in_specs=[
                pl.BlockSpec((1, 2, Lp), lambda b, t, ml: (b, 0, 0)),    # bounds
                pl.BlockSpec((1, Lp, Hp), lambda b, t, ml: (b, 0, 0)),   # x
            ],
            out_specs=pl.BlockSpec((1, tt, Hp), lambda b, t, ml: (b, t, 0)),
        ),
        compiler_params=pltpu.CompilerParams(
            dimension_semantics=dim_sem,
            vmem_limit_bytes=32 << 20,   # >= default on all of v5e/v6e/v7x
        ),
    )(mel_len, bounds, x_p)

    # Drop time/feature padding introduced for tiling, then emit the max_len
    # zero tail with XLA (fused, outside the Pallas grid loop).
    out = out[:, :expand_max_len, :H]
    if T_out > expand_max_len:
        out = jnp.pad(out, ((0, 0), (0, T_out - expand_max_len), (0, 0)))
    return out, mel_len


def _reference(x, duration, max_len):
    """Pure-numpy reference mirroring the PyTorch module."""
    x = np.asarray(x)
    duration = np.asarray(duration).astype(np.int64)
    N, L = duration.shape
    H = x.shape[-1]
    expand_max_len = int(duration.sum(-1).max())
    align = np.zeros((N, expand_max_len, L), dtype=x.dtype)
    for i in range(N):
        count = 0
        for j in range(L):
            for k in range(duration[i, j]):
                align[i, count + k, j] = 1
            count += duration[i, j]
    out = align @ x
    if max_len is not None and max_len > out.shape[1]:
        pad = np.zeros((N, max_len - out.shape[1], H), dtype=x.dtype)
        out = np.concatenate([out, pad], axis=1)
    return out, duration.sum(-1)


if __name__ == "__main__":
    key = jax.random.PRNGKey(0)
    kx, kd = jax.random.split(key)

    N, L, H = 2, 8, 32
    x = jax.random.normal(kx, (N, L, H), dtype=jnp.float32)
    duration = jax.random.randint(kd, (N, L), 0, 4, dtype=jnp.int32)
    max_len = 40  # > expand_max_len, exercises the XLA zero tail

    out, mel_len = length_regulator(x, duration, max_len=max_len)
    jax.block_until_ready((out, mel_len))

    ref_out, ref_len = _reference(np.asarray(x), np.asarray(duration), max_len)
    assert out.shape == ref_out.shape, (out.shape, ref_out.shape)
    np.testing.assert_allclose(np.asarray(out), ref_out, rtol=1e-5, atol=1e-5)
    np.testing.assert_array_equal(np.asarray(mel_len), ref_len)

    # No max_len path (output time = expand_max_len exactly).
    out2, _ = length_regulator(x, duration, max_len=None)
    jax.block_until_ready(out2)
    ref_out2, _ = _reference(np.asarray(x), np.asarray(duration), None)
    assert out2.shape == ref_out2.shape, (out2.shape, ref_out2.shape)
    np.testing.assert_allclose(np.asarray(out2), ref_out2, rtol=1e-5, atol=1e-5)

    # bf16 path: native MXU input dtype, f32 accumulation (exact row selection,
    # only x's own bf16 rounding differs from the f32 reference).
    out_bf16, _ = length_regulator(x.astype(jnp.bfloat16), duration, max_len=max_len)
    jax.block_until_ready(out_bf16)
    np.testing.assert_allclose(
        np.asarray(out_bf16).astype(np.float32), ref_out, rtol=2e-2, atol=2e-2
    )

    print("KERNEL_OK")
</pallas_src>

<mosaic_0001>
module attributes {stable_mosaic.version = 11 : i64} {
  func.func @_length_regulator_kernel(%arg0: i32, %arg1: i32, %arg2: memref<2xi32, #tpu.memory_space<smem>>, %arg3: memref<1x2x128xi32, #tpu.memory_space<vmem>>, %arg4: memref<1x128x128xf32, #tpu.memory_space<vmem>>, %arg5: memref<1x16x128xf32, #tpu.memory_space<vmem>>) attributes {dimension_semantics = [#tpu.dimension_semantics<parallel>, #tpu.dimension_semantics<arbitrary>], iteration_bounds = array<i64: 2, 1>, scalar_prefetch = 1 : i64, scratch_operands = 0 : i64, tpu.core_type = #tpu.core_type<tc>, window_params = [{transform_indices = @transform_0, window_bounds = array<i64: 1, 2, 128>}, {transform_indices = @transform_1, window_bounds = array<i64: 1, 128, 128>}, {transform_indices = @transform_2, window_bounds = array<i64: 1, 16, 128>}]} {
    %c16_i32 = arith.constant 16 : i32
    %0 = arith.muli %arg1, %c16_i32 : i32
    %1 = arith.index_cast %arg0 : i32 to index
    %2 = memref.load %arg2[%1] : memref<2xi32, #tpu.memory_space<smem>>
    %3 = arith.cmpi sge, %0, %2 : i32
    %4 = arith.extui %3 : i1 to i32
    %c0_i32 = arith.constant 0 : i32
    %5 = arith.cmpi ne, %4, %c0_i32 : i32
    scf.if %5 {
      %cst = arith.constant 0.000000e+00 : f32
      %9 = vector.broadcast %cst : f32 to vector<1x16x128xf32>
      %c0 = arith.constant 0 : index
      %c0_1 = arith.constant 0 : index
      %c0_2 = arith.constant 0 : index
      %10 = vector.load %arg5[%c0, %c0_1, %c0_2] : memref<1x16x128xf32, #tpu.memory_space<vmem>>, vector<1x16x128xf32>
      tpu.vector_store %arg5[%c0, %c0_1, %c0_2], %9 {strides = array<i32>} : memref<1x16x128xf32, #tpu.memory_space<vmem>>, vector<1x16x128xf32>,
    } else {
    }
    %6 = arith.cmpi slt, %0, %2 : i32
    %7 = arith.extui %6 : i1 to i32
    %c0_i32_0 = arith.constant 0 : i32
    %8 = arith.cmpi ne, %7, %c0_i32_0 : i32
    scf.if %8 {
      %c0 = arith.constant 0 : index
      %c0_1 = arith.constant 0 : index
      %c0_2 = arith.constant 0 : index
      %9 = vector.load %arg3[%c0, %c0_1, %c0_2] : memref<1x2x128xi32, #tpu.memory_space<vmem>>, vector<1x1x128xi32>
      %10 = vector.shape_cast %9 : vector<1x1x128xi32> to vector<1x128xi32>
      %c0_3 = arith.constant 0 : index
      %c1 = arith.constant 1 : index
      %c0_4 = arith.constant 0 : index
      %11 = vector.load %arg3[%c0_3, %c1, %c0_4] : memref<1x2x128xi32, #tpu.memory_space<vmem>>, vector<1x1x128xi32>
      %12 = vector.shape_cast %11 : vector<1x1x128xi32> to vector<1x128xi32>
      %13 = tpu.iota {dimensions = array<i32: 0>} : vector<16x1xi32>
      %14 = vector.broadcast %0 : i32 to vector<16x1xi32>
      %15 = arith.addi %13, %14 : vector<16x1xi32>
      %16 = vector.broadcast %15 : vector<16x1xi32> to vector<16x128xi32>
      %17 = vector.broadcast %10 : vector<1x128xi32> to vector<16x128xi32>
      %18 = arith.cmpi sge, %16, %17 : vector<16x128xi32>
      %19 = vector.broadcast %15 : vector<16x1xi32> to vector<16x128xi32>
      %20 = vector.broadcast %12 : vector<1x128xi32> to vector<16x128xi32>
      %21 = arith.cmpi slt, %19, %20 : vector<16x128xi32>
      %22 = arith.andi %18, %21 : vector<16x128xi1>
      %23 = arith.extui %22 : vector<16x128xi1> to vector<16x128xi32>
      %24 = arith.sitofp %23 : vector<16x128xi32> to vector<16x128xf32>
      %c0_5 = arith.constant 0 : index
      %c0_6 = arith.constant 0 : index
      %c0_7 = arith.constant 0 : index
      %25 = vector.load %arg4[%c0_5, %c0_6, %c0_7] : memref<1x128x128xf32, #tpu.memory_space<vmem>>, vector<1x128x128xf32>
      %26 = vector.shape_cast %25 : vector<1x128x128xf32> to vector<128x128xf32>
      %cst = arith.constant dense<0.000000e+00> : vector<16x128xf32>
      %27 = tpu.matmul %24, %26, %cst {dimension_numbers = #tpu.dot_dimension_numbers<[1], [0], [0], [1], [0, 0, 1, 1], [], []>} : vector<16x128xf32>, vector<128x128xf32>, vector<16x128xf32> -> vector<16x128xf32>
      %c0_8 = arith.constant 0 : index
      %c0_9 = arith.constant 0 : index
      %c0_10 = arith.constant 0 : index
      %28 = vector.load %arg5[%c0_8, %c0_9, %c0_10] : memref<1x16x128xf32, #tpu.memory_space<vmem>>, vector<1x16x128xf32>
      %29 = vector.shape_cast %28 : vector<1x16x128xf32> to vector<16x128xf32>
      %30 = vector.shape_cast %27 : vector<16x128xf32> to vector<1x16x128xf32>
      tpu.vector_store %arg5[%c0_8, %c0_9, %c0_10], %30 {strides = array<i32>} : memref<1x16x128xf32, #tpu.memory_space<vmem>>, vector<1x16x128xf32>,
    } else {
    }
    return
  }
  func.func @transform_0(%arg0: i32, %arg1: i32, %arg2: memref<2xi32, #tpu.memory_space<smem>>) -> (i32, i32, i32) {
    %c0_i32 = arith.constant 0 : i32
    %c0_i32_0 = arith.constant 0 : i32
    %c0_i32_1 = arith.constant 0 : i32
    return %arg0, %c0_i32, %c0_i32_0 : i32, i32, i32
  }
  func.func @transform_1(%arg0: i32, %arg1: i32, %arg2: memref<2xi32, #tpu.memory_space<smem>>) -> (i32, i32, i32) {
    %c0_i32 = arith.constant 0 : i32
    %c0_i32_0 = arith.constant 0 : i32
    %c0_i32_1 = arith.constant 0 : i32
    return %arg0, %c0_i32, %c0_i32_0 : i32, i32, i32
  }
  func.func @transform_2(%arg0: i32, %arg1: i32, %arg2: memref<2xi32, #tpu.memory_space<smem>>) -> (i32, i32, i32) {
    %c0_i32 = arith.constant 0 : i32
    %c0_i32_0 = arith.constant 0 : i32
    return %arg0, %arg1, %c0_i32 : i32, i32, i32
  }
}

</mosaic_0001>

<bundles_post_ra>
// kernel: tpu_custom_call.1
= control target key start
LH: loop header
LB: loop body
LE: loop exit
PB: predicated region body
PF: predicated region fallthrough
CT: control target
= control target key end

     0   :  { %s707_s15 = smov [#allocation3]   ;;  %s912_s0 = inlined_call_operand.hbm [shape: s32[2], index: 0, kind: input, shape index: {}]   ;;  %s913_s1 = inlined_call_operand.hbm [shape: s32[2,2,128], index: 1, kind: input, shape index: {}]   ;;  %s914_s2 = inlined_call_operand.hbm [shape: f32[2,128,128], index: 2, kind: input, shape index: {}]   ;;  %s915_s3 = inlined_call_operand.hbm [shape: f32[2,16,128], index: 3, kind: output, shape index: {}]  }
   0x1   :  { %s9_s14 = sshll.u32 %s912_s0, 4  ;;  %s10_s14 = int_to_ptr.hbm [resolvable:$true] %s9_s14 }
   0x2   :  { %12 = dma.hbm_to_smem %s10_s14, 16, %s707_s15, [#allocation2] }
   0x3   :  { %669 = dma.done.wait [#allocation2], 16 }
   0x4   :  { %670 = vsyncadd [#allocation2], 4294967280 }
   0x5   :  { %15 = sfence }
   0x6   :  { %16 = vsyncpa [#allocation5], 0 }
   0x7   :  { %18 = vsyncpa [#allocation5 + $0x1], 0 }
   0x8   :  { %19 = vsyncpa [#allocation8], 0 }
   0x9   :  { %21 = vsyncpa [#allocation8 + $0x1], 0 }
   0xa   :  { %22 = vsyncpa [#allocation6], 0 }
   0xb   :  { %24 = vsyncpa [#allocation6 + $0x1], 0  ;;  %s737_s16 = smov 0   ;;  %s739_s17 = smov 0  }
   0xc   :  { %s741_s18 = smov 0   ;;  %s743_s19 = smov 0  }
   0xd   :  { %s745_s0 = smov 0   ;;  %s747_s20 = smov 0  }
   0xe LB: > { %s425_s21 = sadd.s32 4294967295, %s705_s20   ;;  %s426_s22 = sadd.s32 4294967294, %s705_s20   ;;  %s705_s20 = sphi %s747_s20, %s30_s20   ;;  %s701_s0 = sphi %s745_s0, %s925_s0   ;;  %s697_s19 = sphi %s743_s19, %s924_s19   ;;  %s693_s18 = sphi %s741_s18, %s923_s18   ;;  %s689_s17 = sphi %s739_s17, %s922_s17   ;;  %s685_s16 = sphi %s737_s16, %s921_s16  }
   0xf   : > { %s42_s23 = sadd.s32 1, %s701_s0  ;;  %s49_s24 = sadd.s32 1, %s693_s18 }
  0x10   : > { %p44_p0 = scmp.ge.s32.totalorder %s42_s23, 2  ;;  %p56_p1 = scmp.ne.s32.totalorder %s693_s18, %s689_s17 }
  0x11   : > { %p57_p2 = scmp.eq.s32.totalorder %s705_s20, 0  ;;  %p62_p3 = scmp.ne.s32.totalorder %s689_s17, %s685_s16 }
  0x12   : > { %s927_s23 = smov (%p44_p0, %s42_s23), 0  ;;  %p63_p5 = scmp.eq.s32.totalorder %s425_s21, 0 }
  0x13   : > { %p778_p4 = por %p57_p2, %p56_p1  ;;  %s46_s26 = ssub.s32 %s701_s0, %s927_s23 }
  0x14   : > { %p114_p6 = scmp.eq.s32.totalorder %s425_s21, 1  ;;  %p47_p7 = scmp.eq.s32.totalorder %s46_s26, 0 }
  0x15   : > { %p784_p8 = por %p63_p5, %p62_p3  ;;  %p120_p10 = scmp.eq.s32.totalorder %s426_s22, 1 }
  0x16   : > { %p788_p9 = por %p114_p6, %p56_p1  ;;  %p428_p12 = scmp.ge.s32.totalorder %s705_s20, 2 }
  0x17   : > { %s793_s29 = scalar_select %p47_p7, %s693_s18, %s49_s24  }
  0x18   : > { %p795_p11 = por %p120_p10, %p62_p3  ;;  %p486_p13 = scmp.lt.s32.totalorder %s705_s20, 2 }
  0x19   : > { %s802_s4 = sand.u32 1, %s693_s18   ;;  %s430_s6 = sshll.u32 %s701_s0, 1 }
  0x1a   : > { %s429_s5 = sshll.u32 %s802_s4, 1  ;;  %s148_s9 = scalar_lea.hbm %s913_s1, %s430_s6 }
  0x1b   : > { %s144_s10 = scalar_lea.vmem [#allocation4], %s429_s5  ;;  %s150_s12 = sshll.u32 %s148_s9, 4  ;;  %s151_s12 = int_to_ptr.hbm [resolvable:$true] %s150_s12 }
  0x1c   : > { %s152_s11 = sshll.u32 %s144_s10, 4  ;;  %p811_p0 = pnand %p486_p13, %p778_p4  ;;  %s153_s11 = int_to_ptr.vmem [resolvable:$true] %s152_s11 }
  0x1d   : > { %p434_p1 = scmp.ge.s32.totalorder %s705_s20, 1  ;;  %p179_p2 = scmp.lt.s32.totalorder %s705_s20, 3 }
  0x1e   : > { %s141_s14 = scalar_lea.sflag [#allocation5], %s802_s4  ;;  %s431_s15 = sshll.u32 %s802_s4, 7 }
  0x1f   : > { %478 = dma.hbm_to_vmem [thread:$0]  (!%p811_p0), %s151_s12, 32, %s153_s11, %s141_s14  }
  0x20   : > { %p180_p3 = pnand %p434_p1, %p179_p2  ;;  %s451_s21 = sshll.u32 %s701_s0, 7 }
  0x21   : > { %s168_s26 = scalar_lea.hbm %s914_s2, %s451_s21  ;;  %s163_s5 = scalar_lea.vmem [#allocation7], %s431_s15 }
  0x22   : > { %s171_s25 = sshll.u32 %s163_s5, 4  ;;  %s169_s6 = sshll.u32 %s168_s26, 4  ;;  %s172_s25 = int_to_ptr.vmem [resolvable:$true] %s171_s25  ;;  %s170_s6 = int_to_ptr.hbm [resolvable:$true] %s169_s6 }
  0x23   : > { %s160_s7 = scalar_lea.sflag [#allocation8], %s802_s4  ;;  %s708_s8 = smov 128  }
  0x24   : > { %s709_s9 = smov 8   ;;  %183 = sbr.rel (%p180_p3) target bundleno = 244 (0xf4), region = 28 }
  0x25   : > { %481 = dma.hbm_to_vmem [thread:$0]  (!%p811_p0), %s170_s6, 2048, %s172_s25, %s160_s7, %s708_s8, %s708_s8, %s709_s9  }
  0x26   : > { %s829_s10 = sand.u32 (!%p180_p3), 1, %s689_s17  }
  0x27   : > { %s435_s11 = sshll.u32 (!%p180_p3), %s829_s10, 1  ;;  %s186_s12 = scalar_lea.sflag (!%p180_p3), [#allocation5], %s829_s10 }
  0x28   : > { %s833_s14 = scalar_lea.vmem (!%p180_p3), [#allocation4], %s435_s11 }
  0x29   : > { %672 = dma.done.wait (%p784_p8), %s186_s12, 32  }
  0x2a   : > { %674 = vsyncadd (%p784_p8), %s186_s12, 4294967264  ;;  %s436_s4 = sshll.u32 %s829_s10, 7  ;;  %s196_s13 = scalar_lea.sflag [#allocation8], %s829_s10 }
  0x2b   : > { %s841_s15 = scalar_lea.vmem [#allocation7], %s436_s4 }
  0x2c   : > { %676 = dma.done.wait (%p784_p8), %s196_s13, 2048  }
  0x2d   : > { %678 = vsyncadd (%p784_p8), %s196_s13, 4294965248  ;;  %s437_s21 = sshll.u32 %s829_s10, 4  ;;  %s228_s22 = sld [smem:[#allocation3 + %s697_s19]] }
  0x2e   : > { %s849_s24 = scalar_lea.vmem [#allocation9], %s437_s21 }
  0x33   : > { %p439_p4 = scmp.gt.s32.totalorder %s228_s22, 0 }
  0x35   : > { %232 = sbr.rel (%p439_p4) target bundleno = 61 (0x3d), region = 40 }
  0x3a   : > { %v710_v0 = vmov 0.0  }
  0x3b   : > { %233 = vst [vmem:[%s849_s24] sm:$0xff] %v710_v0 }
  0x3c   : > { %234 = vst [vmem:[%s849_s24 + $0x8] sm:$0xff] %v710_v0 }
  0x3d PF: > { %p441_p5 = scmp.le.s32.totalorder %s228_s22, 0 }
  0x3f   : > { %238 = sbr.rel (%p441_p5) target bundleno = 228 (0xe4), region = 44 }
  0x44   : > { %v274_v1 = vld [vmem:[%s841_s15 + $0x78] sm:$0xff]  ;;  %v273_v2 = vld [vmem:[%s841_s15 + $0x70] sm:$0xff]  ;;  %v272_v3 = vld [vmem:[%s841_s15 + $0x68] sm:$0xff]  ;;  %v241_v10 = vlaneseq  ;;  %v711_v22 = vmov 1.0  }
  0x45   : > { %275 = vmatpush.msra.mxu0 %v274_v1  ;;  %453 = vmatpush.msra.mxu1 %v274_v1  ;;  %v271_v4 = vld [vmem:[%s841_s15 + $0x60] sm:$0xff]  ;;  %v270_v5 = vld [vmem:[%s841_s15 + $0x58] sm:$0xff]  ;;  %v269_v6 = vld [vmem:[%s841_s15 + $0x50] sm:$0xff] }
  0x46   : > { %v268_v7 = vld [vmem:[%s841_s15 + $0x48] sm:$0xff]  ;;  %v267_v8 = vld [vmem:[%s841_s15 + $0x40] sm:$0xff]  ;;  %v266_v9 = vld [vmem:[%s841_s15 + $0x38] sm:$0xff]  ;;  %v242_v13 = vshrl.u32 %v241_v10, 7 }
  0x47   : > { %276 = vmatpush.msra.mxu0 %v273_v2  ;;  %454 = vmatpush.msra.mxu1 %v273_v2  ;;  %v265_v11 = vld [vmem:[%s841_s15 + $0x30] sm:$0xff]  ;;  %v264_v12 = vld [vmem:[%s841_s15 + $0x28] sm:$0xff]  ;;  %v263_v14 = vld [vmem:[%s841_s15 + $0x20] sm:$0xff] }
  0x48   : > { %v543_v15 = vld [vmem:[%s833_s14] ss:$0 sm:$0xff]  ;;  %v544_v16 = vld [vmem:[%s833_s14 + $0x1] ss:$0 sm:$0xff]  ;;  %v243_v18 = vadd.s32 8, %v242_v13  ;;  %v261_v19 = vld [vmem:[%s841_s15 + $0x10] sm:$0xff] }
  0x49   : > { %277 = vmatpush.msra.mxu0 %v272_v3  ;;  %455 = vmatpush.msra.mxu1 %v272_v3  ;;  %v262_v17 = vld [vmem:[%s841_s15 + $0x18] sm:$0xff]  ;;  %vm248_vm0 = vcmp.ge.s32.totalorder %v242_v13, %v543_v15  ;;  %vm251_vm1 = vcmp.lt.s32.totalorder %v242_v13, %v544_v16  ;;  %v260_v20 = vld [vmem:[%s841_s15 + $0x8] sm:$0xff]  ;;  %v259_v21 = vld [vmem:[%s841_s15] sm:$0xff] }
  0x4a   : > { %vm249_vm2 = vcmp.ge.s32.totalorder %v243_v18, %v543_v15  ;;  %vm252_vm3 = vcmp.lt.s32.totalorder %v243_v18, %v544_v16  ;;  %vm253_vm4 = vmand %vm248_vm0, %vm251_vm1 }
  0x4b   : > { %278 = vmatpush.msra.mxu0 %v271_v4  ;;  %456 = vmatpush.msra.mxu1 %v271_v4  ;;  %vm254_vm5 = vmand %vm249_vm2, %vm252_vm3 }
  0x4d   : > { %279 = vmatpush.msra.mxu0 %v270_v5  ;;  %457 = vmatpush.msra.mxu1 %v270_v5 }
  0x4f   : > { %280 = vmatpush.msra.mxu0 %v269_v6  ;;  %458 = vmatpush.msra.mxu1 %v269_v6 }
  0x51   : > { %281 = vmatpush.msra.mxu0 %v268_v7  ;;  %459 = vmatpush.msra.mxu1 %v268_v7 }
  0x53   : > { %282 = vmatpush.msra.mxu0 %v267_v8  ;;  %460 = vmatpush.msra.mxu1 %v267_v8 }
  0x55   : > { %283 = vmatpush.msra.mxu0 %v266_v9  ;;  %461 = vmatpush.msra.mxu1 %v266_v9 }
  0x57   : > { %284 = vmatpush.msra.mxu0 %v265_v11  ;;  %462 = vmatpush.msra.mxu1 %v265_v11 }
  0x59   : > { %285 = vmatpush.msra.mxu0 %v264_v12  ;;  %463 = vmatpush.msra.mxu1 %v264_v12 }
  0x5b   : > { %286 = vmatpush.msra.mxu0 %v263_v14  ;;  %464 = vmatpush.msra.mxu1 %v263_v14 }
  0x5d   : > { %287 = vmatpush.msra.mxu0 %v262_v17  ;;  %465 = vmatpush.msra.mxu1 %v262_v17 }
  0x5f   : > { %288 = vmatpush.msra.mxu0 %v261_v19  ;;  %466 = vmatpush.msra.mxu1 %v261_v19 }
  0x61   : > { %289 = vmatpush.msra.mxu0 %v260_v20  ;;  %467 = vmatpush.msra.mxu1 %v260_v20 }
  0x63   : > { %290 = vmatpush.msra.mxu0 %v259_v21  ;;  %468 = vmatpush.msra.mxu1 %v259_v21 }
  0x64   : > { %444 = vmatmul.msk.f32.vlgmr.msra.gmra.mxu0 %vm253_vm4, %v711_v22  ;;  %445 = vmatmul.msk.f32.vlgmr.msra.gmra.mxu1 %vm254_vm5, %v711_v22 }
  0xe1   : > { %v292_v23 = vpop.f32.mrf.mxu0  ;;  %v295_v24 = vpop.f32.mrf.mxu1 }
  0xe2   : > { %298 = vst [vmem:[%s849_s24] sm:$0xff] %v292_v23 }
  0xe3   : > { %299 = vst [vmem:[%s849_s24 + $0x8] sm:$0xff] %v295_v24 }
  0xe4 PF: > { %s452_s27 = sshll.u32 %s697_s19, 4  ;;  %s315_s6 = sshll.u32 %s849_s24, 4  ;;  %s316_s6 = int_to_ptr.vmem [resolvable:$true] %s315_s6 }
  0xe5   : > { %s314_s25 = scalar_lea.hbm %s915_s3, %s452_s27  ;;  %s301_s8 = scalar_lea.sflag [#allocation6], %s829_s10 }
  0xe6   : > { %s317_s7 = sshll.u32 %s314_s25, 4  ;;  %s637_s19 = scalar_lea.hbm %s915_s3, 32  ;;  %s318_s7 = int_to_ptr.hbm [resolvable:$true] %s317_s7 }
  0xe7   : > { %s631_s9 = sshra.s32 %s318_s7, 4  ;;  %s632_s9 = int_to_ptr.hbm [resolvable:$true] %s631_s9 }
  0xe8   : > { %s633_s11 = scalar_lea.hbm %s632_s9, 16  ;;  %p638_p10 = scmp.lt.s32.totalorder %s632_s9, %s915_s3 }
  0xe9   : > { %p634_p6 = scmp.ne.s32.totalorder %s632_s9, %s633_s11  ;;  %p639_p13 = scmp.lt.s32.totalorder %s637_s19, %s633_s11 }
  0xeb   : > { %p635_p7 = pnand %p634_p6, %p788_p9  ;;  %p640_p0 = por %p639_p13, %p638_p10 }
  0xed   : > { %p636_p8 = pneg %p635_p7 }
  0xef   : > { %p641_p1 = pnand %p640_p0, %p636_p8 }
  0xf1   : > { %644 = shalt.err (!%p641_p1)
}
  0xf2   : > { %s712_s10 = smov 128   ;;  %s713_s15 = smov 8  }
  0xf3   : > { %473 = dma.vmem_to_hbm [thread:$0]  (%p788_p9), %s316_s6, 256, %s318_s7, %s301_s8, %s712_s10, %s712_s10, %s713_s15  }
  0xf4 PF: > { %s332_s21 = sand.u32 1, %s685_s16   ;;  %p483_p2 = pnand %p428_p12, %p795_p11 }
  0xf5   : > { %s333_s22 = scalar_lea.sflag [#allocation6], %s332_s21 }
  0xf6   : > { %p484_p3 = pneg %p483_p2 }
  0xf8   : > { %680 = dma.done.wait (%p484_p3), %s333_s22, 256  }
  0xf9   : > { %682 = vsyncadd (%p484_p3), %s333_s22, 4294967040  ;;  %s30_s20 = sadd.s32 1, %s705_s20   ;;  %s921_s16 = smov %s689_s17 }
  0xfa   : > { %p27_p4 = scmp.ge.s32.totalorder %s30_s20, 4   ;;  %s922_s17 = smov %s693_s18 }
  0xfb   : > { %s923_s18 = smov %s793_s29  ;;  %s924_s19 = smov %s701_s0 }
  0xfc   : > { %s925_s0 = smov %s927_s23  ;;  %29 = sbr.rel (!%p27_p4) target bundleno = 14 (0xe), region = 94 }
 0x101   :  { %339 = vsyncpa [#allocation5], 1 }
 0x102   :  { %341 = vsyncpa [#allocation5 + $0x1], 1 }
 0x103   :  { %342 = vsyncpa [#allocation8], 1 }
 0x104   :  { %344 = vsyncpa [#allocation8 + $0x1], 1 }
 0x105   :  { %345 = vsyncpa [#allocation6], 1 }
 0x106   :  { %347 = vsyncpa [#allocation6 + $0x1], 1 }

</bundles_post_ra>
